<compile_context>
chip_gen: v5e
topology: v5e:2x2
jax: 0.10.0
libtpu: 0.0.40
codegen_flags: <defaults>
</compile_context>

<pallas_src>
import functools

import jax
import jax.numpy as jnp
from jax.experimental import pallas as pl
from jax.experimental.pallas import tpu as pltpu


def _attr_classifier_kernel(x_ref, w1_ref, b1_ref, w2_ref, b2_ref, o_ref):
    # x:  [TM, F] f32    w1: [F, H] bf16    b1: [1, H] f32
    # w2: [H, O] bf16    b2: [1, O] f32     o:  [TM, O] f32 (0/1)
    x_bf = x_ref[...].astype(jnp.bfloat16)            # in-kernel cast (VPU, hidden under DMA)
    h = jnp.dot(x_bf, w1_ref[...], preferred_element_type=jnp.float32)
    h = jnp.maximum(h + b1_ref[...], 0.0)              # bias + ReLU in f32
    mm2 = jnp.dot(h.astype(jnp.bfloat16), w2_ref[...],
                  preferred_element_type=jnp.float32)
    # round(sigmoid(z)) == (z > 0); fold b2 into the threshold.
    o_ref[...] = (mm2 > -b2_ref[...]).astype(o_ref.dtype)


def _pick_tm(B, F, O, block_m, vmem_budget_bytes=40 << 20):
    """Batch tile: big (amortize per-step overhead), v7x-VMEM-safe, >=2 steps for large B."""
    if B > 256:
        # Aim for at least 2 grid steps so the parallel axis can shard across v7x cores.
        tm = min(block_m, ((pl.cdiv(B, 2) + 7) // 8) * 8)
    else:
        tm = B if B <= block_m else block_m
    # Double-buffered f32 x-tile + f32 out-tile must fit the scoped VMEM budget.
    per_row_bytes = 2 * (F * 4 + O * 4)
    while tm > 8 and tm * per_row_bytes > vmem_budget_bytes:
        tm = max(8, tm // 2)
    if tm != B:
        tm = ((tm + 7) // 8) * 8                       # sublane-aligned tile
    return tm


def prepare_params(w1, b1, w2, b2):
    """Pre-cast/reshape the head parameters ONCE outside the jitted serving call."""
    return (w1.astype(jnp.bfloat16),
            jnp.asarray(b1, jnp.float32).reshape(1, -1),
            w2.astype(jnp.bfloat16),
            jnp.asarray(b2, jnp.float32).reshape(1, -1))


@functools.partial(jax.jit, static_argnames=("block_m",))
def attribute_classifier_inference(x, w1_bf, b1_f, w2_bf, b2_f, *, block_m=1024):
    """round(sigmoid(MLP(x))) as a single batch-tiled Pallas TPU kernel -> f32 0/1."""
    B, F = x.shape
    H = w1_bf.shape[1]
    O = w2_bf.shape[1]

    TM = _pick_tm(B, F, O, block_m)
    grid = (pl.cdiv(B, TM),)

    # Scoped VMEM: cover the double-buffered tiles + resident weights with headroom,
    # but stay under the v7x 64 MiB/TC physical budget (cap at 48 MiB).
    vmem_need = (2 * TM * (F * 4 + O * 4)
                 + 2 * (F * H * 2 + H * 4 + H * O * 2 + O * 4))
    vmem_limit = int(min(max(2 * vmem_need, 32 << 20), 48 << 20))

    out = pl.pallas_call(
        _attr_classifier_kernel,
        out_shape=jax.ShapeDtypeStruct((B, O), jnp.float32),
        grid=grid,
        in_specs=[
            pl.BlockSpec((TM, F), lambda i: (i, 0)),   # batch-tiled activations (f32)
            pl.BlockSpec((F, H), lambda i: (0, 0)),    # resident weights (bf16)
            pl.BlockSpec((1, H), lambda i: (0, 0)),    # resident bias (f32)
            pl.BlockSpec((H, O), lambda i: (0, 0)),    # resident weights (bf16)
            pl.BlockSpec((1, O), lambda i: (0, 0)),    # resident bias (f32)
        ],
        out_specs=pl.BlockSpec((TM, O), lambda i: (i, 0)),
        compiler_params=pltpu.CompilerParams(
            dimension_semantics=("parallel",),         # megacore sharding on v7x
            vmem_limit_bytes=vmem_limit,
        ),
    )(x.astype(jnp.float32), w1_bf, b1_f, w2_bf, b2_f)
    return out


def _reference_decisions(x, w1, b1, w2, b2):
    """Pure-JAX reference on the same bf16-into-MXU / f32-accumulate path."""
    h = jnp.dot(x.astype(jnp.bfloat16), w1.astype(jnp.bfloat16),
                preferred_element_type=jnp.float32) + b1.reshape(1, -1)
    h = jnp.maximum(h, 0.0)
    logits = jnp.dot(h.astype(jnp.bfloat16), w2.astype(jnp.bfloat16),
                     preferred_element_type=jnp.float32) + b2.reshape(1, -1)
    return logits, jnp.round(jax.nn.sigmoid(logits))   # original module semantics


def _check(x, w1, b1, w2, b2, params):
    out = jax.block_until_ready(attribute_classifier_inference(x, *params))
    logits_ref, ref = _reference_decisions(x, w1, b1, w2, b2)
    decided = jnp.abs(logits_ref) > 1e-3               # ignore exact decision boundary
    assert out.shape == ref.shape
    assert bool(jnp.all(jnp.isin(out, jnp.array([0.0, 1.0]))))
    assert bool(jnp.all(jnp.where(decided, out == ref, True))), \
        "Pallas kernel mismatch vs reference"
    return out


if __name__ == "__main__":
    # Small shapes consistent with a feature-vector attribute classifier head.
    B, F, H, O = 8, 32, 64, 16

    key = jax.random.PRNGKey(0)
    kx, k1, kb1, k2, kb2, kx2 = jax.random.split(key, 6)

    x = jax.random.normal(kx, (B, F), dtype=jnp.float32)
    w1 = jax.random.normal(k1, (F, H), dtype=jnp.float32) * 0.1
    b1 = jax.random.normal(kb1, (1, H), dtype=jnp.float32) * 0.1
    w2 = jax.random.normal(k2, (H, O), dtype=jnp.float32) * 0.1
    b2 = jax.random.normal(kb2, (1, O), dtype=jnp.float32) * 0.1

    params = prepare_params(w1, b1, w2, b2)            # cast once, outside serving call

    _check(x, w1, b1, w2, b2, params)                  # single-tile path (grid = 1)

    # Exercise the multi-step / ragged-last-block path (grid = 2, no wrapper padding).
    x_big = jax.random.normal(kx2, (300, F), dtype=jnp.float32)
    _check(x_big, w1, b1, w2, b2, params)

    print("KERNEL_OK")
</pallas_src>

<mosaic_0001>
module attributes {stable_mosaic.version = 11 : i64} {
  func.func @_attr_classifier_kernel(%arg0: i32, %arg1: memref<8x32xf32, #tpu.memory_space<vmem>>, %arg2: memref<32x64xbf16, #tpu.memory_space<vmem>>, %arg3: memref<1x64xf32, #tpu.memory_space<vmem>>, %arg4: memref<64x16xbf16, #tpu.memory_space<vmem>>, %arg5: memref<1x16xf32, #tpu.memory_space<vmem>>, %arg6: memref<8x16xf32, #tpu.memory_space<vmem>>) attributes {dimension_semantics = [#tpu.dimension_semantics<parallel>], iteration_bounds = array<i64: 1>, scalar_prefetch = 0 : i64, scratch_operands = 0 : i64, tpu.core_type = #tpu.core_type<tc>, window_params = [{transform_indices = @transform_0, window_bounds = array<i64: 8, 32>}, {pipeline_mode = #tpu.pipeline_mode<synchronous>, transform_indices = @transform_1, window_bounds = array<i64: 32, 64>}, {pipeline_mode = #tpu.pipeline_mode<synchronous>, transform_indices = @transform_2, window_bounds = array<i64: 1, 64>}, {pipeline_mode = #tpu.pipeline_mode<synchronous>, transform_indices = @transform_3, window_bounds = array<i64: 64, 16>}, {pipeline_mode = #tpu.pipeline_mode<synchronous>, transform_indices = @transform_4, window_bounds = array<i64: 1, 16>}, {transform_indices = @transform_5, window_bounds = array<i64: 8, 16>}]} {
    %c0 = arith.constant 0 : index
    %c0_0 = arith.constant 0 : index
    %0 = vector.load %arg1[%c0, %c0_0] : memref<8x32xf32, #tpu.memory_space<vmem>>, vector<8x32xf32>
    %1 = arith.truncf %0 : vector<8x32xf32> to vector<8x32xbf16>
    %c0_1 = arith.constant 0 : index
    %c0_2 = arith.constant 0 : index
    %2 = vector.load %arg2[%c0_1, %c0_2] : memref<32x64xbf16, #tpu.memory_space<vmem>>, vector<32x64xbf16>
    %cst = arith.constant dense<0.000000e+00> : vector<8x64xf32>
    %3 = tpu.matmul %1, %2, %cst {dimension_numbers = #tpu.dot_dimension_numbers<[1], [0], [0], [1], [0, 0, 1, 1], [], []>} : vector<8x32xbf16>, vector<32x64xbf16>, vector<8x64xf32> -> vector<8x64xf32>
    %c0_3 = arith.constant 0 : index
    %c0_4 = arith.constant 0 : index
    %4 = vector.load %arg3[%c0_3, %c0_4] : memref<1x64xf32, #tpu.memory_space<vmem>>, vector<1x64xf32>
    %5 = vector.broadcast %4 : vector<1x64xf32> to vector<8x64xf32>
    %6 = arith.addf %3, %5 : vector<8x64xf32>
    %cst_5 = arith.constant 0.000000e+00 : f32
    %7 = vector.broadcast %cst_5 : f32 to vector<8x64xf32>
    %8 = arith.maximumf %6, %7 : vector<8x64xf32>
    %9 = arith.truncf %8 : vector<8x64xf32> to vector<8x64xbf16>
    %c0_6 = arith.constant 0 : index
    %c0_7 = arith.constant 0 : index
    %10 = vector.load %arg4[%c0_6, %c0_7] : memref<64x16xbf16, #tpu.memory_space<vmem>>, vector<64x16xbf16>
    %cst_8 = arith.constant dense<0.000000e+00> : vector<8x16xf32>
    %11 = tpu.matmul %9, %10, %cst_8 {dimension_numbers = #tpu.dot_dimension_numbers<[1], [0], [0], [1], [0, 0, 1, 1], [], []>} : vector<8x64xbf16>, vector<64x16xbf16>, vector<8x16xf32> -> vector<8x16xf32>
    %c0_9 = arith.constant 0 : index
    %c0_10 = arith.constant 0 : index
    %12 = vector.load %arg5[%c0_9, %c0_10] : memref<1x16xf32, #tpu.memory_space<vmem>>, vector<1x16xf32>
    %cst_11 = arith.constant 0.000000e+00 : f32
    %13 = vector.broadcast %cst_11 : f32 to vector<1x16xf32>
    %14 = arith.subf %13, %12 : vector<1x16xf32>
    %15 = vector.broadcast %14 : vector<1x16xf32> to vector<8x16xf32>
    %16 = arith.cmpf ogt, %11, %15 : vector<8x16xf32>
    %17 = arith.extui %16 : vector<8x16xi1> to vector<8x16xi32>
    %18 = arith.sitofp %17 : vector<8x16xi32> to vector<8x16xf32>
    %c0_12 = arith.constant 0 : index
    %c0_13 = arith.constant 0 : index
    %19 = vector.load %arg6[%c0_12, %c0_13] : memref<8x16xf32, #tpu.memory_space<vmem>>, vector<8x16xf32>
    tpu.vector_store %arg6[%c0_12, %c0_13], %18 {strides = array<i32>} : memref<8x16xf32, #tpu.memory_space<vmem>>, vector<8x16xf32>,
    return
  }
  func.func @transform_0(%arg0: i32) -> (i32, i32) {
    %c0_i32 = arith.constant 0 : i32
    %c0_i32_0 = arith.constant 0 : i32
    return %arg0, %c0_i32 : i32, i32
  }
  func.func @transform_1(%arg0: i32) -> (i32, i32) {
    %c0_i32 = arith.constant 0 : i32
    %c0_i32_0 = arith.constant 0 : i32
    %c0_i32_1 = arith.constant 0 : i32
    return %c0_i32, %c0_i32_0 : i32, i32
  }
  func.func @transform_2(%arg0: i32) -> (i32, i32) {
    %c0_i32 = arith.constant 0 : i32
    %c0_i32_0 = arith.constant 0 : i32
    %c0_i32_1 = arith.constant 0 : i32
    return %c0_i32, %c0_i32_0 : i32, i32
  }
  func.func @transform_3(%arg0: i32) -> (i32, i32) {
    %c0_i32 = arith.constant 0 : i32
    %c0_i32_0 = arith.constant 0 : i32
    %c0_i32_1 = arith.constant 0 : i32
    return %c0_i32, %c0_i32_0 : i32, i32
  }
  func.func @transform_4(%arg0: i32) -> (i32, i32) {
    %c0_i32 = arith.constant 0 : i32
    %c0_i32_0 = arith.constant 0 : i32
    %c0_i32_1 = arith.constant 0 : i32
    return %c0_i32, %c0_i32_0 : i32, i32
  }
  func.func @transform_5(%arg0: i32) -> (i32, i32) {
    %c0_i32 = arith.constant 0 : i32
    %c0_i32_0 = arith.constant 0 : i32
    return %arg0, %c0_i32 : i32, i32
  }
}

</mosaic_0001>

<bundles_post_ra>
// kernel: attribute_classifier_inference.1
= control target key start
LH: loop header
LB: loop body
LE: loop exit
PB: predicated region body
PF: predicated region fallthrough
CT: control target
= control target key end

     0   :  { %s262_s0 = inlined_call_operand.vmem [shape: f32[8,32], index: 0, kind: input, shape index: {}]   ;;  %s263_s1 = inlined_call_operand.vmem [shape: bf16[32,64], index: 1, kind: input, shape index: {}]   ;;  %s264_s2 = inlined_call_operand.vmem [shape: f32[1,64], index: 2, kind: input, shape index: {}]   ;;  %s265_s3 = inlined_call_operand.vmem [shape: bf16[64,16], index: 3, kind: input, shape index: {}]   ;;  %s266_s4 = inlined_call_operand.vmem [shape: f32[1,16], index: 4, kind: input, shape index: {}]   ;;  %s267_s5 = inlined_call_operand.hbm [shape: f32[8,16], index: 5, kind: output, shape index: {}]  }
   0x1   :  { %v166_v0 = vld [vmem:[%s263_s1 + $0x8] sm:$0xff]  ;;  %v170_v1 = vld [vmem:[%s265_s3 + $0x18] sm:$0xff]  ;;  %v165_v2 = vld [vmem:[%s263_s1] sm:$0xff] }
   0x2   :  { %54 = vmatpush.bf16.msra.mxu0 %v166_v0  ;;  %v22_v3 = vld [vmem:[%s262_s0] sm:$0xff] }
   0x3   :  { %10 = vsyncpa [#allocation3], 0  ;;  %103 = vmatpush.bf16.msra.mxu1 %v170_v1  ;;  %v169_v4 = vld [vmem:[%s265_s3 + $0x10] sm:$0xff]  ;;  %v23_v5 = vpack.c.bf16 %v22_v3, %v22_v3  ;;  %vm44_vm0 = vcmask 261120   ;;  %v168_v6 = vld [vmem:[%s265_s3 + $0x8] sm:$0xff]  ;;  %vm95_vm1 = vcmask 523264  }
   0x4   :  { %v167_v7 = vld [vmem:[%s265_s3] sm:$0xff]  ;;  %s200_s9 = smov [#allocation2]   ;;  %s129_s12 = sshll.u32 %s267_s5, 4  ;;  %vm120_vm2 = vcmask 130048   ;;  %v201_v18 = vmov 0.0   ;;  %s130_s12 = int_to_ptr.hbm [resolvable:$true] %s129_s12 }
   0x5   :  { %v173_v8 = vld [vmem:[%s264_s2] ss:$0 sm:$0xff]  ;;  %s127_s3 = sshll.u32 %s200_s9, 4  ;;  %s128_s3 = int_to_ptr.vmem [resolvable:$true] %s127_s3 }
   0x6   :  { %55 = vmatpush.bf16.msra.mxu0 %v165_v2  ;;  %v112_v14 = vld [vmem:[%s266_s4] sm:$0x1] }
   0x7   :  { %104 = vmatpush.bf16.msra.mxu1 %v169_v4  ;;  %v113_v15 = vsub.f32 0.0, %v112_v14 }
   0x9   :  { %146 = vmatmul.msk.bf16.vlgmr.msra.gmra.mxu0 %vm44_vm0, %v23_v5  ;;  %v115_v16 = vperm.slane %v113_v15, 0 }
   0xb   :  { %105 = vmatpush.bf16.msra.mxu1 %v168_v6 }
   0xf   :  { %106 = vmatpush.bf16.msra.mxu1 %v167_v7 }
  0x86   :  { %v57_v9 = vpop.f32.mrf.mxu0 }
  0x87   :  { %v58_v10 = vadd.f32 %v173_v8, %v57_v9 }
  0x89   :  { %v61_v11 = vmax.f32 %v58_v10, 0.0 }
  0x8b   :  { %v62_v12 = vpack.c.bf16 %v61_v11, %v61_v11 }
  0x8d   :  { %163 = vmatmul.msk.bf16.vlgmr.msra.gmra.mxu1 %vm95_vm1, %v62_v12 }
  0x8e   :  { %v59_v13 = vpop.f32.mrf.mxu0 }
 0x10a   :  { %v108_v17 = vpop.f32.mrf.mxu1 }
 0x10b   :  { %vm117_vm3 = vcmp.gt.f32.partialorder %v108_v17, %v115_v16 }
 0x10c   :  { %v164_v19 = vsel %vm117_vm3, 1.0, %v201_v18 }
 0x10d   :  { %121 = vst.msk [vmem:[#allocation2] sm:$0xff] %vm120_vm2, %v164_v19 }
 0x10e   :  { %132 = dma.vmem_to_hbm [thread:$0]  %s128_s3, 128, %s130_s12, [#allocation3]  }
 0x112   :  { %v110_v20 = vpop.f32.mrf.mxu1 }
 0x113   :  { %198 = dma.done.wait [#allocation3], 128  }
 0x114   :  { %199 = vsyncadd [#allocation3], 4294967168 }
 0x115   :  { %137 = vsyncpa [#allocation3], 1 }

</bundles_post_ra>
